<compile_context>
chip_gen: v7x
topology: tpu7x:2x2x1
jax: 0.10.0
libtpu: 0.0.40
codegen_flags: <defaults>
</compile_context>

<pallas_src>
import jax
import jax.numpy as jnp
from jax.experimental import pallas as pl
from jax.experimental.pallas import tpu as pltpu


def source_mix_kernel(counts_ref, x_ref, w_ref, bias_ref, null_ref, o_ref):
    # grid = (B, T // t_tile); both axes parallel, no reduction axis.
    b = pl.program_id(0)
    count = counts_ref[b]                      # scalar-prefetched presence count

    @pl.when(count > 0)
    def _():
        # Fused 1x1-conv heads + key-sum: one MXU contraction over K*C (bf16 in,
        # f32 accumulate).  x_ref block: (1, K*C, TT); w_ref: (O, K*C).
        mixed = jnp.dot(w_ref[...], x_ref[0],
                        preferred_element_type=jnp.float32)      # (O, TT)
        o_ref[0] = (mixed + bias_ref[0]).astype(o_ref.dtype)      # bias: (O, 1)

    @pl.when(count == 0)
    def _():
        # Null-source substitution: broadcast learned (O, 1) column over time.
        o_ref[0] = jnp.broadcast_to(null_ref[...],
                                    o_ref[0].shape).astype(o_ref.dtype)


def _pick_t_tile(T, B, max_tile=2048):
    """Largest multiple-of-128 divisor of T, capped at max_tile; keeps >=2 grid
    steps total when B == 1 so both v7x TensorCores get work."""
    assert T % 128 == 0, f"T must be a multiple of 128, got {T}"
    cap = min(T, max_tile)
    if B == 1 and T >= 256:
        cap = min(cap, T // 2)
    best = 128
    for t in range(128, cap + 1, 128):
        if T % t == 0:
            best = t
    return best


def source_mix_forward(x, mask, w, bias, null_source, *, t_tile=None):
    """
    x:           [B, K, C, T]  pre-encoded latents per (source dict, key); zeros
                 where a key is absent (absent keys then contribute 0 to the dot)
    mask:        [B, K] int32  1 if key k is present in source dict b
    w:           [K, O, C]     Conv1d(kernel_size=1) weights, kernel dim squeezed
    bias:        [K, O]
    null_source: [O, 1]
    returns (mixes [B, O, T], ones [B, T]) -- matches the PyTorch module.
    """
    B, K, C, T = x.shape
    O = w.shape[1]
    if t_tile is None:
        t_tile = _pick_t_tile(T, B)
    assert T % t_tile == 0 and t_tile % 128 == 0, (T, t_tile)

    # Layout / dtype plumbing (one-time, contiguous).
    x_fused = x.reshape(B, K * C, T).astype(jnp.bfloat16)            # [B, K*C, T]
    w_fused = (jnp.transpose(w, (1, 0, 2))
               .reshape(O, K * C).astype(jnp.bfloat16))              # [O, K*C]
    # Hoisted per-batch bias over present keys and presence counts.
    bias_eff = (mask.astype(jnp.float32) @ bias).reshape(B, O, 1)    # [B, O, 1]
    counts = jnp.sum(mask, axis=1).astype(jnp.int32)                 # [B]
    null = null_source.reshape(O, 1).astype(jnp.float32)             # [O, 1]

    mixes = pl.pallas_call(
        source_mix_kernel,
        out_shape=jax.ShapeDtypeStruct((B, O, T), jnp.float32),
        grid_spec=pltpu.PrefetchScalarGridSpec(
            num_scalar_prefetch=1,                 # counts -> SMEM
            grid=(B, T // t_tile),
            in_specs=[
                pl.BlockSpec((1, K * C, t_tile), lambda b, t, c: (b, 0, t)),
                pl.BlockSpec((O, K * C),         lambda b, t, c: (0, 0)),
                pl.BlockSpec((1, O, 1),          lambda b, t, c: (b, 0, 0)),
                pl.BlockSpec((O, 1),             lambda b, t, c: (0, 0)),
            ],
            out_specs=pl.BlockSpec((1, O, t_tile), lambda b, t, c: (b, 0, t)),
        ),
        compiler_params=pltpu.CompilerParams(
            dimension_semantics=("parallel", "parallel")),
    )(counts, x_fused, w_fused, bias_eff, null)

    ones = jnp.ones((B, T), dtype=mixes.dtype)     # torch.ones(B, T)
    return mixes, ones


def reference_forward(x, mask, w, bias, null_source):
    """Pure-JAX f32 reference mirroring the PyTorch forward."""
    contrib = jnp.einsum('bkct,koc->bkot', x, w) + bias[None, :, :, None]
    mixed = jnp.sum(mask.astype(x.dtype)[:, :, None, None] * contrib, axis=1)
    counts = jnp.sum(mask, axis=1)
    mixed = jnp.where(counts[:, None, None] > 0, mixed, null_source[None, :, :])
    ones = jnp.ones((mixed.shape[0], mixed.shape[2]), dtype=mixed.dtype)
    return mixed, ones


if __name__ == "__main__":
    # small config consistent with the module:
    #   pretransform.encoded_channels = C, output_dim = O,
    #   source_keys -> K heads, source_length = T
    B, K, C, O, T = 2, 3, 16, 32, 2048

    key = jax.random.PRNGKey(0)
    k_w, k_b, k_null, k_x0, k_x2 = jax.random.split(key, 5)

    # Conv1d(kernel_size=1) weight is (O, C, 1) in torch; stored here as (K, O, C).
    w = 0.1 * jax.random.normal(k_w, (K, O, C), dtype=jnp.float32)
    bias = 0.1 * jax.random.normal(k_b, (K, O), dtype=jnp.float32)
    null_source = jax.random.normal(k_null, (O, 1), dtype=jnp.float32)

    # sources: batch entry 0 has keys {0, 2}; batch entry 1 has none (null source)
    mask = jnp.array([[1, 0, 1],
                      [0, 0, 0]], dtype=jnp.int32)
    lat0 = jax.random.normal(k_x0, (C, T), dtype=jnp.float32)   # [channels, time]
    lat2 = jax.random.normal(k_x2, (C, T), dtype=jnp.float32)

    x = jnp.zeros((B, K, C, T), dtype=jnp.float32)
    x = x.at[0, 0].set(lat0)
    x = x.at[0, 2].set(lat2)

    mixes, ones = source_mix_forward(x, mask, w, bias, null_source)
    jax.block_until_ready(mixes)
    jax.block_until_ready(ones)

    ref_mixes, ref_ones = reference_forward(x, mask, w, bias, null_source)

    assert mixes.shape == (B, O, T), mixes.shape
    assert ones.shape == (B, T), ones.shape
    # Latents stream through the MXU in bf16 (f32 accumulation), so compare to the
    # f32 torch-faithful reference with a bf16-quantization tolerance.
    assert jnp.allclose(mixes, ref_mixes, atol=5e-2, rtol=5e-2), (
        float(jnp.max(jnp.abs(mixes - ref_mixes))))
    assert jnp.allclose(ones, ref_ones)

    print("KERNEL_OK")
</pallas_src>

<mosaic_0001>
module attributes {stable_mosaic.version = 11 : i64} {
  func.func @source_mix_kernel(%arg0: i32, %arg1: i32, %arg2: memref<2xi32, #tpu.memory_space<smem>>, %arg3: memref<1x48x2048xbf16, #tpu.memory_space<vmem>>, %arg4: memref<32x48xbf16, #tpu.memory_space<vmem>>, %arg5: memref<1x32x1xf32, #tpu.memory_space<vmem>>, %arg6: memref<32x1xf32, #tpu.memory_space<vmem>>, %arg7: memref<1x32x2048xf32, #tpu.memory_space<vmem>>) attributes {dimension_semantics = [#tpu.dimension_semantics<parallel>, #tpu.dimension_semantics<parallel>], iteration_bounds = array<i64: 2, 1>, scalar_prefetch = 1 : i64, scratch_operands = 0 : i64, tpu.core_type = #tpu.core_type<tc>, window_params = [{transform_indices = @transform_0, window_bounds = array<i64: 1, 48, 2048>}, {pipeline_mode = #tpu.pipeline_mode<synchronous>, transform_indices = @transform_1, window_bounds = array<i64: 32, 48>}, {transform_indices = @transform_2, window_bounds = array<i64: 1, 32, 1>}, {pipeline_mode = #tpu.pipeline_mode<synchronous>, transform_indices = @transform_3, window_bounds = array<i64: 32, 1>}, {transform_indices = @transform_4, window_bounds = array<i64: 1, 32, 2048>}]} {
    %0 = arith.index_cast %arg0 : i32 to index
    %1 = memref.load %arg2[%0] : memref<2xi32, #tpu.memory_space<smem>>
    %c0_i32 = arith.constant 0 : i32
    %2 = arith.cmpi sgt, %1, %c0_i32 : i32
    %3 = arith.extui %2 : i1 to i32
    %c0_i32_0 = arith.constant 0 : i32
    %4 = arith.cmpi ne, %3, %c0_i32_0 : i32
    scf.if %4 {
      %c0 = arith.constant 0 : index
      %c0_3 = arith.constant 0 : index
      %8 = vector.load %arg4[%c0, %c0_3] : memref<32x48xbf16, #tpu.memory_space<vmem>>, vector<32x48xbf16>
      %c0_4 = arith.constant 0 : index
      %c0_5 = arith.constant 0 : index
      %c0_6 = arith.constant 0 : index
      %9 = vector.load %arg3[%c0_4, %c0_5, %c0_6] : memref<1x48x2048xbf16, #tpu.memory_space<vmem>>, vector<1x48x2048xbf16>
      %10 = vector.shape_cast %9 : vector<1x48x2048xbf16> to vector<48x2048xbf16>
      %cst = arith.constant dense<0.000000e+00> : vector<32x2048xf32>
      %11 = tpu.matmul %8, %10, %cst {dimension_numbers = #tpu.dot_dimension_numbers<[1], [0], [0], [1], [0, 0, 1, 1], [], []>} : vector<32x48xbf16>, vector<48x2048xbf16>, vector<32x2048xf32> -> vector<32x2048xf32>
      %c0_7 = arith.constant 0 : index
      %c0_8 = arith.constant 0 : index
      %c0_9 = arith.constant 0 : index
      %12 = vector.load %arg5[%c0_7, %c0_8, %c0_9] : memref<1x32x1xf32, #tpu.memory_space<vmem>>, vector<1x32x1xf32>
      %13 = vector.shape_cast %12 : vector<1x32x1xf32> to vector<32x1xf32>
      %14 = vector.broadcast %13 : vector<32x1xf32> to vector<32x2048xf32>
      %15 = arith.addf %11, %14 : vector<32x2048xf32>
      %c0_10 = arith.constant 0 : index
      %c0_11 = arith.constant 0 : index
      %c0_12 = arith.constant 0 : index
      %16 = vector.load %arg7[%c0_10, %c0_11, %c0_12] : memref<1x32x2048xf32, #tpu.memory_space<vmem>>, vector<1x32x2048xf32>
      %17 = vector.shape_cast %16 : vector<1x32x2048xf32> to vector<32x2048xf32>
      %18 = vector.shape_cast %15 : vector<32x2048xf32> to vector<1x32x2048xf32>
      tpu.vector_store %arg7[%c0_10, %c0_11, %c0_12], %18 {strides = array<i32>} : memref<1x32x2048xf32, #tpu.memory_space<vmem>>, vector<1x32x2048xf32>,
    } else {
    }
    %c0_i32_1 = arith.constant 0 : i32
    %5 = arith.cmpi eq, %1, %c0_i32_1 : i32
    %6 = arith.extui %5 : i1 to i32
    %c0_i32_2 = arith.constant 0 : i32
    %7 = arith.cmpi ne, %6, %c0_i32_2 : i32
    scf.if %7 {
      %c0 = arith.constant 0 : index
      %c0_3 = arith.constant 0 : index
      %8 = vector.load %arg6[%c0, %c0_3] : memref<32x1xf32, #tpu.memory_space<vmem>>, vector<32x1xf32>
      %9 = vector.shape_cast %8 : vector<32x1xf32> to vector<32x1xf32>
      %10 = vector.broadcast %9 : vector<32x1xf32> to vector<32x2048xf32>
      %c0_4 = arith.constant 0 : index
      %c0_5 = arith.constant 0 : index
      %c0_6 = arith.constant 0 : index
      %11 = vector.load %arg7[%c0_4, %c0_5, %c0_6] : memref<1x32x2048xf32, #tpu.memory_space<vmem>>, vector<1x32x2048xf32>
      %12 = vector.shape_cast %11 : vector<1x32x2048xf32> to vector<32x2048xf32>
      %13 = vector.shape_cast %10 : vector<32x2048xf32> to vector<1x32x2048xf32>
      tpu.vector_store %arg7[%c0_4, %c0_5, %c0_6], %13 {strides = array<i32>} : memref<1x32x2048xf32, #tpu.memory_space<vmem>>, vector<1x32x2048xf32>,
    } else {
    }
    return
  }
  func.func @transform_0(%arg0: i32, %arg1: i32, %arg2: memref<2xi32, #tpu.memory_space<smem>>) -> (i32, i32, i32) {
    %c0_i32 = arith.constant 0 : i32
    %c0_i32_0 = arith.constant 0 : i32
    return %arg0, %c0_i32, %arg1 : i32, i32, i32
  }
  func.func @transform_1(%arg0: i32, %arg1: i32, %arg2: memref<2xi32, #tpu.memory_space<smem>>) -> (i32, i32) {
    %c0_i32 = arith.constant 0 : i32
    %c0_i32_0 = arith.constant 0 : i32
    %c0_i32_1 = arith.constant 0 : i32
    return %c0_i32, %c0_i32_0 : i32, i32
  }
  func.func @transform_2(%arg0: i32, %arg1: i32, %arg2: memref<2xi32, #tpu.memory_space<smem>>) -> (i32, i32, i32) {
    %c0_i32 = arith.constant 0 : i32
    %c0_i32_0 = arith.constant 0 : i32
    %c0_i32_1 = arith.constant 0 : i32
    return %arg0, %c0_i32, %c0_i32_0 : i32, i32, i32
  }
  func.func @transform_3(%arg0: i32, %arg1: i32, %arg2: memref<2xi32, #tpu.memory_space<smem>>) -> (i32, i32) {
    %c0_i32 = arith.constant 0 : i32
    %c0_i32_0 = arith.constant 0 : i32
    %c0_i32_1 = arith.constant 0 : i32
    return %c0_i32, %c0_i32_0 : i32, i32
  }
  func.func @transform_4(%arg0: i32, %arg1: i32, %arg2: memref<2xi32, #tpu.memory_space<smem>>) -> (i32, i32, i32) {
    %c0_i32 = arith.constant 0 : i32
    %c0_i32_0 = arith.constant 0 : i32
    return %arg0, %c0_i32, %arg1 : i32, i32, i32
  }
}

</mosaic_0001>

<bundles_post_ra>
// kernel: tpu_custom_call.1
= control target key start
LH: loop header
LB: loop body
LE: loop exit
PB: predicated region body
PF: predicated region fallthrough
CT: control target
= control target key end

     0   :  { %s2146_s0 = inlined_call_operand.vmem [shape: s32[2], index: 0, kind: input, shape index: {}]   ;;  %s2147_s1 = inlined_call_operand.hbm [shape: bf16[2,48,2048], index: 1, kind: input, shape index: {}]   ;;  %s2148_s2 = inlined_call_operand.vmem [shape: bf16[32,48], index: 2, kind: input, shape index: {}]   ;;  %s2149_s3 = inlined_call_operand.vmem [shape: f32[2,32,1], index: 3, kind: input, shape index: {}]   ;;  %s2150_s4 = inlined_call_operand.vmem [shape: f32[32,1], index: 4, kind: input, shape index: {}]   ;;  %s2151_s5 = inlined_call_operand.hbm [shape: f32[2,32,2048], index: 5, kind: output, shape index: {}]  }
   0x1   :  { %s10_s20 = sshll.u32 %s2146_s0, 4  ;;  %s11_s20 = int_to_ptr.vmem [resolvable:$true] %s10_s20 }
   0x2   :  { %s1459_s21 = scalar_lea.vmem %s11_s20, 16  ;;  %p1464_p1 = scmp.lt.s32.totalorder %s11_s20, %s11_s20 }
   0x3   :  { %p1460_p0 = scmp.ne.s32.totalorder %s11_s20, %s1459_s21  ;;  %p1465_p2 = scmp.lt.s32.totalorder %s1459_s21, %s1459_s21 }
   0x5   :  { %p1466_p3 = por %p1465_p2, %p1464_p1 }
   0x7   :  { %p1467_p4 = pnand %p1466_p3, %p1460_p0 }
   0x9   :  { %1470 = shalt.err (!%p1467_p4)  }
   0xa   :  { %s1587_s22 = smov [#allocation3]  }
   0xb   :  { %13 = dma.vmem_to_smem %s11_s20, 16, %s1587_s22, [#allocation2] }
   0xc   :  { %1553 = dma.done.wait [#allocation2], 16 }
   0xd   :  { %1554 = vsyncadd [#allocation2], 4294967280 }
   0xe   :  { %15 = sfence }
   0xf   :  { %16 = vsyncpa [#allocation5], 0 }
  0x10   :  { %18 = vsyncpa [#allocation5 + $0x1], 0 }
  0x11   :  { %19 = vsyncpa [#allocation6], 0 }
  0x12   :  { %21 = vsyncpa [#allocation6 + $0x1], 0  ;;  %s1629_s23 = smov 0   ;;  %s1631_s0 = smov 0  }
  0x13   :  { %s1633_s24 = smov 0   ;;  %s1635_s25 = smov 0  }
  0x14   :  { %s1637_s26 = smov 0   ;;  %s1639_s27 = smov 0  }
  0x15 LB: > { %s1297_s28 = sadd.s32 4294967295, %s1585_s27   ;;  %s1298_s29 = sadd.s32 4294967294, %s1585_s27   ;;  %s1585_s27 = sphi %s1639_s27, %s27_s27   ;;  %s1581_s26 = sphi %s1637_s26, %s2166_s26   ;;  %s1577_s25 = sphi %s1635_s25, %s2165_s25   ;;  %s1573_s24 = sphi %s1633_s24, %s2164_s24   ;;  %s1569_s0 = sphi %s1631_s0, %s2163_s0   ;;  %s1565_s23 = sphi %s1629_s23, %s2162_s23  }
  0x16   : > { %s39_s30 = sadd.s32 1, %s1581_s26  ;;  %s48_s6 = sadd.s32 1, %s1573_s24 }
  0x17   : > { %p41_p5 = scmp.ge.s32.totalorder %s39_s30, 2  ;;  %p55_p6 = scmp.ne.s32.totalorder %s1573_s24, %s1569_s0 }
  0x18   : > { %p56_p7 = scmp.eq.s32.totalorder %s1585_s27, 0  ;;  %p61_p8 = scmp.ne.s32.totalorder %s1569_s0, %s1565_s23 }
  0x19   : > { %s2168_s30 = smov (%p41_p5, %s39_s30), 0  ;;  %p62_p10 = scmp.eq.s32.totalorder %s1297_s28, 0 }
  0x1a   : > { %p1670_p9 = por %p56_p7, %p55_p6  ;;  %s43_s8 = ssub.s32 %s1581_s26, %s2168_s30 }
  0x1b   : > { %p155_p11 = scmp.eq.s32.totalorder %s1297_s28, 1  ;;  %p46_p12 = scmp.eq.s32.totalorder %s43_s8, 0 }
  0x1c   : > { %p1676_p13 = por %p62_p10, %p61_p8  ;;  %p161_p1 = scmp.eq.s32.totalorder %s1298_s29, 1 }
  0x1d   : > { %p1680_p0 = por %p155_p11, %p55_p6  ;;  %p1396_p4 = scmp.lt.s32.totalorder %s1585_s27, 2 }
  0x1e   : > { %s1685_s11 = scalar_select %p46_p12, %s1573_s24, %s48_s6  }
  0x1f   : > { %s2155_s10 = scalar_select %p1680_p0, 1, 0 }
  0x20   : > { %p1687_p2 = por %p161_p1, %p61_p8  ;;  %s187_s13 = sand.u32 1, %s1573_s24  }
  0x21   : > { %s1381_s14 = smul.u32 384, %s187_s13  ;;  %p1697_p5 = pnand %p1396_p4, %p1670_p9 }
  0x22   : > { %s2156_s12 = scalar_select %p1687_p2, 1, 0 }
  0x23   : > { %s1382_s15 = smul.u32 6144, %s1581_s26  ;;  %s191_s20 = scalar_lea.vmem [#allocation4], %s1381_s14 }
  0x24   : > { %s200_s21 = sshll.u32 %s191_s20, 4  ;;  %s1709_s22 = scalar_lea.sflag [#allocation5], %s187_s13  ;;  %s1706_s21 = int_to_ptr.vmem [resolvable:$true] %s200_s21 }
  0x25   : > { %s1704_s19 = scalar_lea.hbm %s2147_s1, %s1382_s15  ;;  %p1473_p8 = pneg %p1697_p5 }
  0x26   : > { %s1471_s28 = scalar_lea.hbm %s1704_s19, 6144  ;;  %s1476_s7 = scalar_lea.hbm %s2147_s1, 12288 }
  0x27   : > { %p1472_p7 = scmp.ne.s32.totalorder %s1704_s19, %s1471_s28  ;;  %p1477_p11 = scmp.lt.u32.totalorder %s1704_s19, %s2147_s1 }
  0x28   : > { %p1478_p12 = scmp.lt.u32.totalorder %s1476_s7, %s1471_s28  ;;  %p1480_p4 = scmp.lt.u32.totalorder %s1471_s28, %s1704_s19 }
  0x29   : > { %p1474_p9 = pnand %p1473_p8, %p1472_p7 }
  0x2a   : > { %p1479_p1 = por %p1478_p12, %p1477_p11 }
  0x2b   : > { %p1475_p10 = pneg %p1474_p9 }
  0x2c   : > { %p1481_p3 = por %p1480_p4, %p1479_p1 }
  0x2e   : > { %p1482_p6 = pnand %p1481_p3, %p1475_p10 }
  0x30   : > { %1485 = shalt.err (!%p1482_p6)
}
  0x31   : > { %s1486_s13 = scalar_lea.vmem %s1706_s21, 6144  ;;  %s1588_s15 = smov [#allocation4]  }
  0x32   : > { %p1487_p7 = scmp.ne.s32.totalorder %s1706_s21, %s1486_s13  ;;  %s1491_s17 = sshll.u32 %s1588_s15, 4  ;;  %s1492_s17 = int_to_ptr.vmem [resolvable:$false] %s1491_s17 }
  0x33   : > { %s1493_s18 = scalar_lea.vmem %s1492_s17, 12288  ;;  %p1494_p0 = scmp.lt.s32.totalorder %s1706_s21, %s1492_s17 }
  0x34   : > { %p1489_p9 = pnand %p1487_p7, %p1473_p8  ;;  %p1495_p11 = scmp.lt.s32.totalorder %s1493_s18, %s1486_s13 }
  0x36   : > { %p1490_p2 = pneg %p1489_p9  ;;  %p1496_p12 = por %p1495_p11, %p1494_p0 }
  0x38   : > { %p1497_p1 = pnand %p1496_p12, %p1490_p2 }
  0x3a   : > { %1500 = shalt.err (!%p1497_p1)
}
  0x3b   : > { %s1589_s20 = smov 1024   ;;  %s1590_s28 = smov 64  }
  0x3c   : > { %1391 = dma.hbm_to_vmem [thread:$0]  (!%p1697_p5), %s1704_s19, 6144, %s1706_s21, %s1709_s22, %s1589_s20, %s1589_s20, %s1590_s28  }
  0x3d   : > { %p216_p3 = scmp.lt.s32.totalorder %s1585_s27, 3  ;;  %p2158_p6 = scmp.ge.s32.totalorder %s1585_s27, 1 }
  0x3f   : > { %p217_p8 = pnand %p2158_p6, %p216_p3 }
  0x40   : > { %s1741_s29 = sand.u32 (!%p217_p8), 1, %s1569_s0  }
  0x41   : > { %220 = sbr.rel (%p217_p8) target bundleno = 560 (0x230), region = 36  ;;  %s223_s7 = scalar_lea.sflag (!%p217_p8), [#allocation5], %s1741_s29 }
  0x42   : > { %s1383_s6 = smul.u32 (!%p217_p8), 384, %s1741_s29 }
  0x44   : > { %s1745_s8 = scalar_lea.vmem (!%p217_p8), [#allocation4], %s1383_s6 }
  0x48   : > { %1556 = dma.done.wait (%p1676_p13), %s223_s7, 6144  }
  0x49   : > { %1558 = vsyncadd (%p1676_p13), %s223_s7, 4294961152  ;;  %s1303_s16 = sshll.u32 %s1741_s29, 9  ;;  %p257_p0 = scmp.lt.s32.totalorder %s1577_s25, 1 }
  0x4a   : > { %s1754_s19 = sld [smem:[#allocation3 + %s1577_s25]]  ;;  %s1762_s17 = scalar_lea.vmem [#allocation7], %s1303_s16 }
  0x4b   : > { %s258_s21 = scalar_select %p257_p0, %s1577_s25, 1 }
  0x4d   : > { %s1379_s22 = sshll.u32 %s258_s21, 5 }
  0x4e   : > { %s1760_s15 = scalar_lea.vmem %s2149_s3, %s1379_s22 }
  0x50   : > { %p1306_p2 = scmp.le.s32.totalorder %s1754_s19, 0 }
  0x51   : > { %v273_v0 = vld [vmem:[%s1745_s8] sm:$0xff] (!%p1306_p2)  ;;  %v274_v2 = vld [vmem:[%s1745_s8 + $0x8] sm:$0xff] (!%p1306_p2)  ;;  %v1591_v8 = vmov (!%p1306_p2), 0   ;;  %v275_v23 = vld [vmem:[%s1745_s8 + $0x10] sm:$0xff] (!%p1306_p2)  ;;  %vm595_vm0 = vcmask (!%p1306_p2), 392192  }
  0x52   : > { %268 = sbr.rel (%p1306_p2) target bundleno = 371 (0x173), region = 44  ;;  %v281_v1 = vld [vmem:[%s1745_s8 + $0x40] sm:$0xff] (!%p1306_p2)  ;;  %v282_v4 = vld [vmem:[%s1745_s8 + $0x48] sm:$0xff] (!%p1306_p2)  ;;  %634 = vmatprep.mubr.bf16.mxu0 (!%p1306_p2), %v1591_v8  ;;  %687 = vmatprep.mubr.bf16.mxu1 (!%p1306_p2), %v1591_v8  ;;  %v283_v24 = vld [vmem:[%s1745_s8 + $0x50] sm:$0xff] (!%p1306_p2) }
  0x53   : > { %v1310_v3 = vcombine.high (!%p1306_p2), %v273_v0, %v281_v1  ;;  %v1309_v5 = vcombine.low (!%p1306_p2), %v273_v0, %v281_v1  ;;  %v289_v6 = vld [vmem:[%s1745_s8 + $0x80] sm:$0xff] (!%p1306_p2)  ;;  %v1312_v9 = vcombine.high (!%p1306_p2), %v274_v2, %v282_v4  ;;  %v1311_v10 = vcombine.low (!%p1306_p2), %v274_v2, %v282_v4  ;;  %v290_v12 = vld [vmem:[%s1745_s8 + $0x88] sm:$0xff] (!%p1306_p2)  ;;  %1453 = vset.pattern.permute.xlu0 (!%p1306_p2), %v1591_v8  ;;  %v276_v25 = vld [vmem:[%s1745_s8 + $0x18] sm:$0xff] (!%p1306_p2) }
  0x54   : > { %v297_v7 = vld [vmem:[%s1745_s8 + $0xc0] sm:$0xff] (!%p1306_p2)  ;;  %v298_v13 = vld [vmem:[%s1745_s8 + $0xc8] sm:$0xff] (!%p1306_p2)  ;;  %1454 = vset.pattern.permute.xlu1 (!%p1306_p2), %v1591_v8  ;;  %v284_v26 = vld [vmem:[%s1745_s8 + $0x58] sm:$0xff] (!%p1306_p2)  ;;  %v1314_v29 = vcombine.high (!%p1306_p2), %v275_v23, %v283_v24  ;;  %v1313_v36 = vcombine.low (!%p1306_p2), %v275_v23, %v283_v24 }
  0x55   : > { %v1326_v11 = vcombine.high (!%p1306_p2), %v289_v6, %v297_v7  ;;  %v305_v14 = vld [vmem:[%s1745_s8 + $0x100] sm:$0xff] (!%p1306_p2)  ;;  %602 = vmatprep.subr.bf16.mxu0 (!%p1306_p2), %v1310_v3  ;;  %v1328_v15 = vcombine.high (!%p1306_p2), %v290_v12, %v298_v13  ;;  %v306_v17 = vld [vmem:[%s1745_s8 + $0x108] sm:$0xff] (!%p1306_p2)  ;;  %655 = vmatprep.subr.bf16.mxu1 (!%p1306_p2), %v1312_v9  ;;  %v1325_v19 = vcombine.low (!%p1306_p2), %v289_v6, %v297_v7  ;;  %v291_v31 = vld [vmem:[%s1745_s8 + $0x90] sm:$0xff] (!%p1306_p2) }
  0x56   : > { %v313_v16 = vld [vmem:[%s1745_s8 + $0x140] sm:$0xff] (!%p1306_p2)  ;;  %v314_v18 = vld [vmem:[%s1745_s8 + $0x148] sm:$0xff] (!%p1306_p2)  ;;  %603 = vmatpush1.bf16.msra.mxu0 (!%p1306_p2), %v1309_v5  ;;  %656 = vmatpush1.bf16.msra.mxu1 (!%p1306_p2), %v1311_v10  ;;  %v1327_v20 = vcombine.low (!%p1306_p2), %v290_v12, %v298_v13  ;;  %v1316_v30 = vcombine.high (!%p1306_p2), %v276_v25, %v284_v26  ;;  %v299_v32 = vld [vmem:[%s1745_s8 + $0xd0] sm:$0xff] (!%p1306_p2)  ;;  %v1315_v37 = vcombine.low (!%p1306_p2), %v276_v25, %v284_v26 }
  0x57   : > { %604 = vmatprep.subr.bf16.mxu0 (!%p1306_p2), %v1326_v11  ;;  %v1342_v21 = vcombine.high (!%p1306_p2), %v305_v14, %v313_v16  ;;  %657 = vmatprep.subr.bf16.mxu1 (!%p1306_p2), %v1328_v15  ;;  %v1344_v22 = vcombine.high (!%p1306_p2), %v306_v17, %v314_v18  ;;  %v1341_v27 = vcombine.low (!%p1306_p2), %v305_v14, %v313_v16  ;;  %v1790_v33 = vld [vmem:[%s2148_s2] sm:$0xff] (!%p1306_p2)   ;;  %v292_v34 = vld [vmem:[%s1745_s8 + $0x98] sm:$0xff] (!%p1306_p2)  ;;  %v307_v40 = vld [vmem:[%s1745_s8 + $0x110] sm:$0xff] (!%p1306_p2) }
  0x58   : > { %v1343_v28 = vcombine.low (!%p1306_p2), %v306_v17, %v314_v18  ;;  %v300_v35 = vld [vmem:[%s1745_s8 + $0xd8] sm:$0xff] (!%p1306_p2)  ;;  %v1330_v38 = vcombine.high (!%p1306_p2), %v291_v31, %v299_v32  ;;  %v315_v41 = vld [vmem:[%s1745_s8 + $0x150] sm:$0xff] (!%p1306_p2)  ;;  %v1329_v44 = vcombine.low (!%p1306_p2), %v291_v31, %v299_v32  ;;  %v321_v48 = vld [vmem:[%s1760_s15] sm:$0xff] (!%p1306_p2) }
  0x59   : > { %v1332_v39 = vcombine.high %v292_v34, %v300_v35  ;;  %v308_v42 = vld [vmem:[%s1745_s8 + $0x118] sm:$0xff]  ;;  %v1331_v45 = vcombine.low %v292_v34, %v300_v35  ;;  %v1346_v46 = vcombine.high %v307_v40, %v315_v41  ;;  %v323_v49 = vld [vmem:[%s1760_s15 + $0x10] sm:$0xff]  ;;  %v1809_v50 = vld [vmem:[%s2148_s2 + $0x8] sm:$0xff]   ;;  %327 = vperm.xlu0 %1453, %v321_v48   ;;  %v1345_v53 = vcombine.low %v307_v40, %v315_v41 }
  0x5a   : > { %605 = vmatpush1.bf16.msra.mxu0 %v1325_v19  ;;  %658 = vmatpush1.bf16.msra.mxu1 %v1327_v20  ;;  %v316_v43 = vld [vmem:[%s1745_s8 + $0x158] sm:$0xff]  ;;  %v277_v51 = vld [vmem:[%s1745_s8 + $0x20] sm:$0xff]  ;;  %v278_v54 = vld [vmem:[%s1745_s8 + $0x28] sm:$0xff] }
  0x5b   : > { %606 = vmatprep.subr.bf16.mxu0 %v1342_v21  ;;  %659 = vmatprep.subr.bf16.mxu1 %v1344_v22  ;;  %v1348_v47 = vcombine.high %v308_v42, %v316_v43  ;;  %v285_v52 = vld [vmem:[%s1745_s8 + $0x60] sm:$0xff]  ;;  %v286_v55 = vld [vmem:[%s1745_s8 + $0x68] sm:$0xff]  ;;  %v1347_v57 = vcombine.low %v308_v42, %v316_v43  ;;  %v324_v60 = vld [vmem:[%s1760_s15 + $0x18] sm:$0xff] }
  0x5c   : > { %v322_v56 = vld [vmem:[%s1760_s15 + $0x8] sm:$0xff]  ;;  %337 = vperm.xlu1 %1454, %v323_v49   ;;  %v1318_v58 = vcombine.high %v277_v51, %v285_v52  ;;  %v1320_v59 = vcombine.high %v278_v54, %v286_v55  ;;  %v293_v61 = vld [vmem:[%s1745_s8 + $0xa0] sm:$0xff]  ;;  %v1317_v1 = vcombine.low %v277_v51, %v285_v52  ;;  %v1319_v2 = vcombine.low %v278_v54, %v286_v55  ;;  %v279_v14 = vld [vmem:[%s1745_s8 + $0x30] sm:$0xff] }
  0x5d   : > { %332 = vperm.xlu0 %1453, %v322_v56   ;;  %v301_v62 = vld [vmem:[%s1745_s8 + $0xe0] sm:$0xff]  ;;  %v294_v63 = vld [vmem:[%s1745_s8 + $0xa8] sm:$0xff]  ;;  %v287_v15 = vld [vmem:[%s1745_s8 + $0x70] sm:$0xff] }
  0x5e   : > { %607 = vmatpush1.bf16.msra.mxu0 %v1341_v27  ;;  %660 = vmatpush1.bf16.msra.mxu1 %v1343_v28  ;;  %v302_v0 = vld [vmem:[%s1745_s8 + $0xe8] sm:$0xff]  ;;  %v1334_v3 = vcombine.high %v293_v61, %v301_v62  ;;  %v309_v5 = vld [vmem:[%s1745_s8 + $0x120] sm:$0xff]  ;;  %v1333_v10 = vcombine.low %v293_v61, %v301_v62  ;;  %v280_v17 = vld [vmem:[%s1745_s8 + $0x38] sm:$0xff]  ;;  %v1322_v20 = vcombine.high %v279_v14, %v287_v15 }
  0x5f   : > { %708 = vmatprep.subr.bf16.mxu0 %v1314_v29  ;;  %761 = vmatprep.subr.bf16.mxu1 %v1316_v30  ;;  %v1336_v4 = vcombine.high %v294_v63, %v302_v0  ;;  %v317_v6 = vld [vmem:[%s1745_s8 + $0x160] sm:$0xff]  ;;  %v310_v7 = vld [vmem:[%s1745_s8 + $0x128] sm:$0xff]  ;;  %v1335_v11 = vcombine.low %v294_v63, %v302_v0  ;;  %v288_v18 = vld [vmem:[%s1745_s8 + $0x78] sm:$0xff]  ;;  %v1321_v26 = vcombine.low %v279_v14, %v287_v15 }
  0x60   : > { %342 = vperm.xlu1 %1454, %v324_v60   ;;  %v318_v9 = vld [vmem:[%s1745_s8 + $0x168] sm:$0xff]  ;;  %v1350_v12 = vcombine.high %v309_v5, %v317_v6  ;;  %v1349_v16 = vcombine.low %v309_v5, %v317_v6  ;;  %v1324_v21 = vcombine.high %v280_v17, %v288_v18  ;;  %v295_v22 = vld [vmem:[%s1745_s8 + $0xb0] sm:$0xff]  ;;  %v296_v24 = vld [vmem:[%s1745_s8 + $0xb8] sm:$0xff]  ;;  %v1323_v27 = vcombine.low %v280_v17, %v288_v18 }
  0x61   : > { %1357 = vmatmul.mubr.msk.bf16.vlgmr.msra.gmra.mrb[0].mxu0 %vm595_vm0, %v1790_v33  ;;  %1359 = vmatmul.mubr.msk.bf16.vlgmr.msra.gmra.mrb[0].mxu1 %vm595_vm0, %v1790_v33  ;;  %v1352_v13 = vcombine.high %v310_v7, %v318_v9  ;;  %v1351_v19 = vcombine.low %v310_v7, %v318_v9  ;;  %v303_v23 = vld [vmem:[%s1745_s8 + $0xf0] sm:$0xff]  ;;  %v304_v25 = vld [vmem:[%s1745_s8 + $0xf8] sm:$0xff] }
  0x62   : > { %709 = vmatpush1.bf16.msra.mxu0 %v1313_v36  ;;  %762 = vmatpush1.bf16.msra.mxu1 %v1315_v37  ;;  %v1338_v28 = vcombine.high %v295_v22, %v303_v23  ;;  %v1340_v29 = vcombine.high %v296_v24, %v304_v25  ;;  %v311_v30 = vld [vmem:[%s1745_s8 + $0x130] sm:$0xff]  ;;  %v312_v32 = vld [vmem:[%s1745_s8 + $0x138] sm:$0xff]  ;;  %v1337_v35 = vcombine.low %v295_v22, %v303_v23 }
  0x63   : > { %710 = vmatprep.subr.bf16.mxu0 %v1330_v38  ;;  %763 = vmatprep.subr.bf16.mxu1 %v1332_v39  ;;  %v319_v31 = vld [vmem:[%s1745_s8 + $0x170] sm:$0xff]  ;;  %v320_v34 = vld [vmem:[%s1745_s8 + $0x178] sm:$0xff]  ;;  %v1339_v36 = vcombine.low %v296_v24, %v304_v25 }
  0x64   : > { %644 = vmatprep.mubr.bf16.mxu0 %v1591_v8  ;;  %697 = vmatprep.mubr.bf16.mxu1 %v1591_v8  ;;  %v1354_v37 = vcombine.high %v311_v30, %v319_v31  ;;  %v1356_v38 = vcombine.high %v312_v32, %v320_v34  ;;  %v1353_v39 = vcombine.low %v311_v30, %v319_v31 }
  0x65   : > { %v1355_v40 = vcombine.low %v312_v32, %v320_v34 }
  0x66   : > { %711 = vmatpush1.bf16.msra.mxu0 %v1329_v44  ;;  %764 = vmatpush1.bf16.msra.mxu1 %v1331_v45 }
  0x67   : > { %712 = vmatprep.subr.bf16.mxu0 %v1346_v46  ;;  %765 = vmatprep.subr.bf16.mxu1 %v1348_v47 }
  0x69   : > { %1358 = vmatmul.mubr.msk.bf16.gmra.mrb[4].mxu0 %vm595_vm0, %v1809_v50  ;;  %1360 = vmatmul.mubr.msk.bf16.gmra.mrb[4].mxu1 %vm595_vm0, %v1809_v50 }
  0x6a   : > { %713 = vmatpush1.bf16.msra.mxu0 %v1345_v53  ;;  %766 = vmatpush1.bf16.msra.mxu1 %v1347_v57 }
  0x6b   : > { %740 = vmatprep.mubr.bf16.mxu0 %v1591_v8  ;;  %793 = vmatprep.mubr.bf16.mxu1 %v1591_v8 }
  0x6c   : > { %814 = vmatprep.subr.bf16.mxu0 %v1318_v58  ;;  %867 = vmatprep.subr.bf16.mxu1 %v1320_v59 }
  0x71   : > { %1361 = vmatmul.mubr.msk.bf16.vlgmr.msra.gmra.mrb[8].mxu0 %vm595_vm0, %v1790_v33  ;;  %1363 = vmatmul.mubr.msk.bf16.vlgmr.msra.gmra.mrb[8].mxu1 %vm595_vm0, %v1790_v33 }
  0x72   : > { %815 = vmatpush1.bf16.msra.mxu0 %v1317_v1  ;;  %868 = vmatpush1.bf16.msra.mxu1 %v1319_v2 }
  0x73   : > { %816 = vmatprep.subr.bf16.mxu0 %v1334_v3  ;;  %869 = vmatprep.subr.bf16.mxu1 %v1336_v4 }
  0x74   : > { %750 = vmatprep.mubr.bf16.mxu0 %v1591_v8  ;;  %803 = vmatprep.mubr.bf16.mxu1 %v1591_v8 }
  0x76   : > { %817 = vmatpush1.bf16.msra.mxu0 %v1333_v10  ;;  %870 = vmatpush1.bf16.msra.mxu1 %v1335_v11 }
  0x77   : > { %818 = vmatprep.subr.bf16.mxu0 %v1350_v12  ;;  %871 = vmatprep.subr.bf16.mxu1 %v1352_v13 }
  0x79   : > { %1362 = vmatmul.mubr.msk.bf16.gmra.mrb[12].mxu0 %vm595_vm0, %v1809_v50  ;;  %1364 = vmatmul.mubr.msk.bf16.gmra.mrb[12].mxu1 %vm595_vm0, %v1809_v50 }
  0x7a   : > { %819 = vmatpush1.bf16.msra.mxu0 %v1349_v16  ;;  %872 = vmatpush1.bf16.msra.mxu1 %v1351_v19 }
  0x7b   : > { %846 = vmatprep.mubr.bf16.mxu0 %v1591_v8  ;;  %899 = vmatprep.mubr.bf16.mxu1 %v1591_v8 }
  0x7c   : > { %920 = vmatprep.subr.bf16.mxu0 %v1322_v20  ;;  %973 = vmatprep.subr.bf16.mxu1 %v1324_v21 }
  0x81   : > { %1365 = vmatmul.mubr.msk.bf16.vlgmr.msra.gmra.mrb[16].mxu0 %vm595_vm0, %v1790_v33  ;;  %1367 = vmatmul.mubr.msk.bf16.vlgmr.msra.gmra.mrb[16].mxu1 %vm595_vm0, %v1790_v33 }
  0x82   : > { %921 = vmatpush1.bf16.msra.mxu0 %v1321_v26  ;;  %974 = vmatpush1.bf16.msra.mxu1 %v1323_v27 }
  0x83   : > { %922 = vmatprep.subr.bf16.mxu0 %v1338_v28  ;;  %975 = vmatprep.subr.bf16.mxu1 %v1340_v29 }
  0x84   : > { %856 = vmatprep.mubr.bf16.mxu0 %v1591_v8  ;;  %909 = vmatprep.mubr.bf16.mxu1 %v1591_v8 }
  0x86   : > { %923 = vmatpush1.bf16.msra.mxu0 %v1337_v35  ;;  %976 = vmatpush1.bf16.msra.mxu1 %v1339_v36 }
  0x87   : > { %924 = vmatprep.subr.bf16.mxu0 %v1354_v37  ;;  %977 = vmatprep.subr.bf16.mxu1 %v1356_v38 }
  0x89   : > { %1366 = vmatmul.mubr.msk.bf16.gmra.mrb[20].mxu0 %vm595_vm0, %v1809_v50  ;;  %1368 = vmatmul.mubr.msk.bf16.gmra.mrb[20].mxu1 %vm595_vm0, %v1809_v50 }
  0x8a   : > { %925 = vmatpush1.bf16.msra.mxu0 %v1353_v39  ;;  %978 = vmatpush1.bf16.msra.mxu1 %v1355_v40 }
  0x8b   : > { %952 = vmatprep.mubr.bf16.mxu0 %v1591_v8  ;;  %1005 = vmatprep.mubr.bf16.mxu1 %v1591_v8 }
  0x91   : > { %1369 = vmatmul.mubr.msk.bf16.vlgmr.msra.gmra.mrb[24].mxu0 %vm595_vm0, %v1790_v33  ;;  %1371 = vmatmul.mubr.msk.bf16.vlgmr.msra.gmra.mrb[24].mxu1 %vm595_vm0, %v1790_v33 }
  0x92   : > { %962 = vmatprep.mubr.bf16.mxu0 %v1591_v8  ;;  %1015 = vmatprep.mubr.bf16.mxu1 %v1591_v8 }
  0x99   : > { %1370 = vmatmul.mubr.msk.bf16.gmra.mrb[28].mxu0 %vm595_vm0, %v1809_v50  ;;  %1372 = vmatmul.mubr.msk.bf16.gmra.mrb[28].mxu1 %vm595_vm0, %v1809_v50 }
  0xd8   : > { %v1877_v41 = vpop.permute.xlu0 %327 }
  0xdb   : > { %v1879_v42 = vpop.permute.xlu1 %337 }
  0xdc   : > { %v1881_v44 = vpop.permute.xlu0 %332 }
  0xdf   : > { %v1899_v59 = vpop.permute.xlu1 %342 }
 0x134   : > { %v636_v43 = vpop.f32.mrb[0].mxu0  ;;  %v689_v45 = vpop.f32.mrb[0].mxu1 }
 0x135   : > { %v637_v33 = vadd.f32 %v636_v43, %v1877_v41  ;;  %v638_v8 = vpop.f32.mrb[1].mxu0  ;;  %v690_v46 = vadd.f32 %v689_v45, %v1877_v41  ;;  %v691_v48 = vpop.f32.mrb[1].mxu1 }
 0x136   : > { %v639_v47 = vadd.f32 %v638_v8, %v1877_v41  ;;  %v640_v49 = vpop.f32.mrb[2].mxu0  ;;  %v692_v50 = vadd.f32 %v691_v48, %v1877_v41  ;;  %v693_v52 = vpop.f32.mrb[2].mxu1 }
 0x137   : > { %1026 = vst [vmem:[%s1762_s17] sm:$0xff] %v637_v33  ;;  %v641_v51 = vadd.f32 %v640_v49, %v1881_v44  ;;  %v642_v53 = vpop.f32.mrb[3].mxu0  ;;  %1028 = vst [vmem:[%s1762_s17 + $0x10] sm:$0xff] %v690_v46  ;;  %v694_v54 = vadd.f32 %v693_v52, %v1881_v44  ;;  %v695_v56 = vpop.f32.mrb[3].mxu1 }
 0x138   : > { %1027 = vst [vmem:[%s1762_s17 + $0x8] sm:$0xff] %v639_v47  ;;  %v643_v55 = vadd.f32 %v642_v53, %v1881_v44  ;;  %1029 = vst [vmem:[%s1762_s17 + $0x18] sm:$0xff] %v692_v50  ;;  %v696_v57 = vadd.f32 %v695_v56, %v1881_v44 }
 0x139   : > { %1042 = vst [vmem:[%s1762_s17 + $0x80] sm:$0xff] %v641_v51  ;;  %1044 = vst [vmem:[%s1762_s17 + $0x90] sm:$0xff] %v694_v54 }
 0x13a   : > { %1043 = vst [vmem:[%s1762_s17 + $0x88] sm:$0xff] %v643_v55  ;;  %1045 = vst [vmem:[%s1762_s17 + $0x98] sm:$0xff] %v696_v57 }
 0x13c   : > { %v646_v58 = vpop.f32.mrb[4].mxu0  ;;  %v699_v61 = vpop.f32.mrb[4].mxu1 }
 0x13d   : > { %v647_v60 = vadd.f32 %v646_v58, %v1879_v42  ;;  %v648_v62 = vpop.f32.mrb[5].mxu0  ;;  %v700_v63 = vadd.f32 %v699_v61, %v1879_v42  ;;  %v701_v1 = vpop.f32.mrb[5].mxu1 }
 0x13e   : > { %v649_v0 = vadd.f32 %v648_v62, %v1879_v42  ;;  %v650_v2 = vpop.f32.mrb[6].mxu0  ;;  %v702_v3 = vadd.f32 %v701_v1, %v1879_v42  ;;  %v703_v5 = vpop.f32.mrb[6].mxu1 }
 0x13f   : > { %1058 = vst [vmem:[%s1762_s17 + $0x100] sm:$0xff] %v647_v60  ;;  %v651_v4 = vadd.f32 %v650_v2, %v1899_v59  ;;  %v652_v6 = vpop.f32.mrb[7].mxu0  ;;  %1060 = vst [vmem:[%s1762_s17 + $0x110] sm:$0xff] %v700_v63  ;;  %v704_v7 = vadd.f32 %v703_v5, %v1899_v59  ;;  %v705_v10 = vpop.f32.mrb[7].mxu1 }
 0x140   : > { %1059 = vst [vmem:[%s1762_s17 + $0x108] sm:$0xff] %v649_v0  ;;  %v653_v9 = vadd.f32 %v652_v6, %v1899_v59  ;;  %1061 = vst [vmem:[%s1762_s17 + $0x118] sm:$0xff] %v702_v3  ;;  %v706_v11 = vadd.f32 %v705_v10, %v1899_v59 }
 0x141   : > { %1074 = vst [vmem:[%s1762_s17 + $0x180] sm:$0xff] %v651_v4  ;;  %1076 = vst [vmem:[%s1762_s17 + $0x190] sm:$0xff] %v704_v7 }
 0x142   : > { %1075 = vst [vmem:[%s1762_s17 + $0x188] sm:$0xff] %v653_v9  ;;  %1077 = vst [vmem:[%s1762_s17 + $0x198] sm:$0xff] %v706_v11 }
 0x144   : > { %v742_v12 = vpop.f32.mrb[8].mxu0  ;;  %v795_v14 = vpop.f32.mrb[8].mxu1 }
 0x145   : > { %v743_v13 = vadd.f32 %v742_v12, %v1877_v41  ;;  %v744_v15 = vpop.f32.mrb[9].mxu0  ;;  %v796_v16 = vadd.f32 %v795_v14, %v1877_v41  ;;  %v797_v18 = vpop.f32.mrb[9].mxu1 }
 0x146   : > { %v745_v17 = vadd.f32 %v744_v15, %v1877_v41  ;;  %v746_v19 = vpop.f32.mrb[10].mxu0  ;;  %v798_v20 = vadd.f32 %v797_v18, %v1877_v41  ;;  %v799_v22 = vpop.f32.mrb[10].mxu1 }
 0x147   : > { %1030 = vst [vmem:[%s1762_s17 + $0x20] sm:$0xff] %v743_v13  ;;  %v747_v21 = vadd.f32 %v746_v19, %v1881_v44  ;;  %v748_v23 = vpop.f32.mrb[11].mxu0  ;;  %1032 = vst [vmem:[%s1762_s17 + $0x30] sm:$0xff] %v796_v16  ;;  %v800_v24 = vadd.f32 %v799_v22, %v1881_v44  ;;  %v801_v26 = vpop.f32.mrb[11].mxu1 }
 0x148   : > { %1031 = vst [vmem:[%s1762_s17 + $0x28] sm:$0xff] %v745_v17  ;;  %v749_v25 = vadd.f32 %v748_v23, %v1881_v44  ;;  %1033 = vst [vmem:[%s1762_s17 + $0x38] sm:$0xff] %v798_v20  ;;  %v802_v27 = vadd.f32 %v801_v26, %v1881_v44 }
 0x149   : > { %1046 = vst [vmem:[%s1762_s17 + $0xa0] sm:$0xff] %v747_v21  ;;  %1048 = vst [vmem:[%s1762_s17 + $0xb0] sm:$0xff] %v800_v24 }
 0x14a   : > { %1047 = vst [vmem:[%s1762_s17 + $0xa8] sm:$0xff] %v749_v25  ;;  %1049 = vst [vmem:[%s1762_s17 + $0xb8] sm:$0xff] %v802_v27 }
 0x14c   : > { %v752_v28 = vpop.f32.mrb[12].mxu0  ;;  %v805_v30 = vpop.f32.mrb[12].mxu1 }
 0x14d   : > { %v753_v29 = vadd.f32 %v752_v28, %v1879_v42  ;;  %v754_v31 = vpop.f32.mrb[13].mxu0  ;;  %v806_v32 = vadd.f32 %v805_v30, %v1879_v42  ;;  %v807_v35 = vpop.f32.mrb[13].mxu1 }
 0x14e   : > { %v755_v34 = vadd.f32 %v754_v31, %v1879_v42  ;;  %v756_v36 = vpop.f32.mrb[14].mxu0  ;;  %v808_v37 = vadd.f32 %v807_v35, %v1879_v42  ;;  %v809_v39 = vpop.f32.mrb[14].mxu1 }
 0x14f   : > { %1062 = vst [vmem:[%s1762_s17 + $0x120] sm:$0xff] %v753_v29  ;;  %v757_v38 = vadd.f32 %v756_v36, %v1899_v59  ;;  %v758_v40 = vpop.f32.mrb[15].mxu0  ;;  %1064 = vst [vmem:[%s1762_s17 + $0x130] sm:$0xff] %v806_v32  ;;  %v810_v43 = vadd.f32 %v809_v39, %v1899_v59  ;;  %v811_v45 = vpop.f32.mrb[15].mxu1 }
 0x150   : > { %1063 = vst [vmem:[%s1762_s17 + $0x128] sm:$0xff] %v755_v34  ;;  %v759_v33 = vadd.f32 %v758_v40, %v1899_v59  ;;  %1065 = vst [vmem:[%s1762_s17 + $0x138] sm:$0xff] %v808_v37  ;;  %v812_v8 = vadd.f32 %v811_v45, %v1899_v59 }
 0x151   : > { %1078 = vst [vmem:[%s1762_s17 + $0x1a0] sm:$0xff] %v757_v38  ;;  %1080 = vst [vmem:[%s1762_s17 + $0x1b0] sm:$0xff] %v810_v43 }
 0x152   : > { %1079 = vst [vmem:[%s1762_s17 + $0x1a8] sm:$0xff] %v759_v33  ;;  %1081 = vst [vmem:[%s1762_s17 + $0x1b8] sm:$0xff] %v812_v8 }
 0x154   : > { %v848_v46 = vpop.f32.mrb[16].mxu0  ;;  %v901_v48 = vpop.f32.mrb[16].mxu1 }
 0x155   : > { %v849_v47 = vadd.f32 %v848_v46, %v1877_v41  ;;  %v850_v49 = vpop.f32.mrb[17].mxu0  ;;  %v902_v50 = vadd.f32 %v901_v48, %v1877_v41  ;;  %v903_v52 = vpop.f32.mrb[17].mxu1 }
 0x156   : > { %v851_v51 = vadd.f32 %v850_v49, %v1877_v41  ;;  %v852_v53 = vpop.f32.mrb[18].mxu0  ;;  %v904_v54 = vadd.f32 %v903_v52, %v1877_v41  ;;  %v905_v56 = vpop.f32.mrb[18].mxu1 }
 0x157   : > { %1034 = vst [vmem:[%s1762_s17 + $0x40] sm:$0xff] %v849_v47  ;;  %v853_v55 = vadd.f32 %v852_v53, %v1881_v44  ;;  %v854_v57 = vpop.f32.mrb[19].mxu0  ;;  %1036 = vst [vmem:[%s1762_s17 + $0x50] sm:$0xff] %v902_v50  ;;  %v906_v58 = vadd.f32 %v905_v56, %v1881_v44  ;;  %v907_v61 = vpop.f32.mrb[19].mxu1 }
 0x158   : > { %1035 = vst [vmem:[%s1762_s17 + $0x48] sm:$0xff] %v851_v51  ;;  %v855_v60 = vadd.f32 %v854_v57, %v1881_v44  ;;  %1037 = vst [vmem:[%s1762_s17 + $0x58] sm:$0xff] %v904_v54  ;;  %v908_v62 = vadd.f32 %v907_v61, %v1881_v44 }
 0x159   : > { %1050 = vst [vmem:[%s1762_s17 + $0xc0] sm:$0xff] %v853_v55  ;;  %1052 = vst [vmem:[%s1762_s17 + $0xd0] sm:$0xff] %v906_v58 }
 0x15a   : > { %1051 = vst [vmem:[%s1762_s17 + $0xc8] sm:$0xff] %v855_v60  ;;  %1053 = vst [vmem:[%s1762_s17 + $0xd8] sm:$0xff] %v908_v62 }
 0x15c   : > { %v858_v63 = vpop.f32.mrb[20].mxu0  ;;  %v911_v1 = vpop.f32.mrb[20].mxu1 }
 0x15d   : > { %v859_v0 = vadd.f32 %v858_v63, %v1879_v42  ;;  %v860_v2 = vpop.f32.mrb[21].mxu0  ;;  %v912_v3 = vadd.f32 %v911_v1, %v1879_v42  ;;  %v913_v5 = vpop.f32.mrb[21].mxu1 }
 0x15e   : > { %v861_v4 = vadd.f32 %v860_v2, %v1879_v42  ;;  %v862_v6 = vpop.f32.mrb[22].mxu0  ;;  %v914_v7 = vadd.f32 %v913_v5, %v1879_v42  ;;  %v915_v10 = vpop.f32.mrb[22].mxu1 }
 0x15f   : > { %1066 = vst [vmem:[%s1762_s17 + $0x140] sm:$0xff] %v859_v0  ;;  %v863_v9 = vadd.f32 %v862_v6, %v1899_v59  ;;  %v864_v11 = vpop.f32.mrb[23].mxu0  ;;  %1068 = vst [vmem:[%s1762_s17 + $0x150] sm:$0xff] %v912_v3  ;;  %v916_v12 = vadd.f32 %v915_v10, %v1899_v59  ;;  %v917_v14 = vpop.f32.mrb[23].mxu1 }
 0x160   : > { %1067 = vst [vmem:[%s1762_s17 + $0x148] sm:$0xff] %v861_v4  ;;  %v865_v13 = vadd.f32 %v864_v11, %v1899_v59  ;;  %1069 = vst [vmem:[%s1762_s17 + $0x158] sm:$0xff] %v914_v7  ;;  %v918_v15 = vadd.f32 %v917_v14, %v1899_v59 }
 0x161   : > { %1082 = vst [vmem:[%s1762_s17 + $0x1c0] sm:$0xff] %v863_v9  ;;  %1084 = vst [vmem:[%s1762_s17 + $0x1d0] sm:$0xff] %v916_v12 }
 0x162   : > { %1083 = vst [vmem:[%s1762_s17 + $0x1c8] sm:$0xff] %v865_v13  ;;  %1085 = vst [vmem:[%s1762_s17 + $0x1d8] sm:$0xff] %v918_v15 }
 0x164   : > { %v954_v16 = vpop.f32.mrb[24].mxu0  ;;  %v1007_v18 = vpop.f32.mrb[24].mxu1 }
 0x165   : > { %v955_v17 = vadd.f32 %v954_v16, %v1877_v41  ;;  %v956_v19 = vpop.f32.mrb[25].mxu0  ;;  %v1008_v20 = vadd.f32 %v1007_v18, %v1877_v41  ;;  %v1009_v22 = vpop.f32.mrb[25].mxu1 }
 0x166   : > { %v957_v21 = vadd.f32 %v956_v19, %v1877_v41  ;;  %v958_v23 = vpop.f32.mrb[26].mxu0  ;;  %v1010_v24 = vadd.f32 %v1009_v22, %v1877_v41  ;;  %v1011_v26 = vpop.f32.mrb[26].mxu1 }
 0x167   : > { %1038 = vst [vmem:[%s1762_s17 + $0x60] sm:$0xff] %v955_v17  ;;  %v959_v25 = vadd.f32 %v958_v23, %v1881_v44  ;;  %v960_v27 = vpop.f32.mrb[27].mxu0  ;;  %1040 = vst [vmem:[%s1762_s17 + $0x70] sm:$0xff] %v1008_v20  ;;  %v1012_v28 = vadd.f32 %v1011_v26, %v1881_v44  ;;  %v1013_v30 = vpop.f32.mrb[27].mxu1 }
 0x168   : > { %1039 = vst [vmem:[%s1762_s17 + $0x68] sm:$0xff] %v957_v21  ;;  %v961_v29 = vadd.f32 %v960_v27, %v1881_v44  ;;  %1041 = vst [vmem:[%s1762_s17 + $0x78] sm:$0xff] %v1010_v24  ;;  %v1014_v31 = vadd.f32 %v1013_v30, %v1881_v44 }
 0x169   : > { %1054 = vst [vmem:[%s1762_s17 + $0xe0] sm:$0xff] %v959_v25  ;;  %1056 = vst [vmem:[%s1762_s17 + $0xf0] sm:$0xff] %v1012_v28 }
 0x16a   : > { %1055 = vst [vmem:[%s1762_s17 + $0xe8] sm:$0xff] %v961_v29  ;;  %1057 = vst [vmem:[%s1762_s17 + $0xf8] sm:$0xff] %v1014_v31 }
 0x16c   : > { %v964_v41 = vpop.f32.mrb[28].mxu0  ;;  %v1017_v34 = vpop.f32.mrb[28].mxu1 }
 0x16d   : > { %v965_v32 = vadd.f32 %v964_v41, %v1879_v42  ;;  %v966_v35 = vpop.f32.mrb[29].mxu0  ;;  %v1018_v36 = vadd.f32 %v1017_v34, %v1879_v42  ;;  %v1019_v38 = vpop.f32.mrb[29].mxu1 }
 0x16e   : > { %v967_v37 = vadd.f32 %v966_v35, %v1879_v42  ;;  %v968_v44 = vpop.f32.mrb[30].mxu0  ;;  %v1020_v39 = vadd.f32 %v1019_v38, %v1879_v42  ;;  %v1021_v43 = vpop.f32.mrb[30].mxu1 }
 0x16f   : > { %1070 = vst [vmem:[%s1762_s17 + $0x160] sm:$0xff] %v965_v32  ;;  %v969_v40 = vadd.f32 %v968_v44, %v1899_v59  ;;  %v970_v33 = vpop.f32.mrb[31].mxu0  ;;  %1072 = vst [vmem:[%s1762_s17 + $0x170] sm:$0xff] %v1018_v36  ;;  %v1022_v45 = vadd.f32 %v1021_v43, %v1899_v59  ;;  %v1023_v46 = vpop.f32.mrb[31].mxu1 }
 0x170   : > { %1071 = vst [vmem:[%s1762_s17 + $0x168] sm:$0xff] %v967_v37  ;;  %v971_v8 = vadd.f32 %v970_v33, %v1899_v59  ;;  %1073 = vst [vmem:[%s1762_s17 + $0x178] sm:$0xff] %v1020_v39  ;;  %v1024_v47 = vadd.f32 %v1023_v46, %v1899_v59 }
 0x171   : > { %1086 = vst [vmem:[%s1762_s17 + $0x1e0] sm:$0xff] %v969_v40  ;;  %1088 = vst [vmem:[%s1762_s17 + $0x1f0] sm:$0xff] %v1022_v45 }
 0x172   : > { %1087 = vst [vmem:[%s1762_s17 + $0x1e8] sm:$0xff] %v971_v8  ;;  %1089 = vst [vmem:[%s1762_s17 + $0x1f8] sm:$0xff] %v1024_v47 }
 0x173 PF: > { %p1373_p13 = scmp.ne.s32.totalorder %s1754_s19, 0 }
 0x174   : > { %v1096_v42 = vld [vmem:[%s2150_s4 + $0x10] sm:$0xff] (!%p1373_p13)  ;;  %v1094_v48 = vld [vmem:[%s2150_s4] sm:$0xff] (!%p1373_p13)  ;;  %v1592_v59 = vmov (!%p1373_p13), 0   ;;  %v1097_v49 = vld [vmem:[%s2150_s4 + $0x18] sm:$0xff] (!%p1373_p13) }
 0x175   : > { %1093 = sbr.rel (%p1373_p13) target bundleno = 534 (0x216), region = 48  ;;  %1458 = vset.pattern.permute.xlu1 (!%p1373_p13), %v1592_v59  ;;  %1457 = vset.pattern.permute.xlu0 (!%p1373_p13), %v1592_v59  ;;  %v1095_v50 = vld [vmem:[%s2150_s4 + $0x8] sm:$0xff] (!%p1373_p13) }
 0x176   : > { %1110 = vperm.xlu1 (!%p1373_p13), %1458, %v1096_v42   ;;  %1100 = vperm.xlu0 (!%p1373_p13), %1457, %v1094_v48  }
 0x17a   : > { %1115 = vperm.xlu1 (!%p1373_p13), %1458, %v1097_v49   ;;  %1105 = vperm.xlu0 (!%p1373_p13), %1457, %v1095_v50  }
 0x1f5   : > { %v1111_v51 = vpop.permute.xlu1 %1110  ;;  %v1101_v52 = vpop.permute.xlu0 %1100 }
 0x1f6   : > { %1150 = vst [vmem:[%s1762_s17 + $0x100] sm:$0xff] %v1111_v51  ;;  %1151 = vst [vmem:[%s1762_s17 + $0x108] sm:$0xff] %v1111_v51 }
 0x1f7   : > { %1152 = vst [vmem:[%s1762_s17 + $0x110] sm:$0xff] %v1111_v51  ;;  %1153 = vst [vmem:[%s1762_s17 + $0x118] sm:$0xff] %v1111_v51 }
 0x1f8   : > { %1154 = vst [vmem:[%s1762_s17 + $0x120] sm:$0xff] %v1111_v51  ;;  %1155 = vst [vmem:[%s1762_s17 + $0x128] sm:$0xff] %v1111_v51 }
 0x1f9   : > { %1156 = vst [vmem:[%s1762_s17 + $0x130] sm:$0xff] %v1111_v51  ;;  %1157 = vst [vmem:[%s1762_s17 + $0x138] sm:$0xff] %v1111_v51  ;;  %v1116_v53 = vpop.permute.xlu1 %1115  ;;  %v1106_v54 = vpop.permute.xlu0 %1105 }
 0x1fa   : > { %1158 = vst [vmem:[%s1762_s17 + $0x140] sm:$0xff] %v1111_v51  ;;  %1159 = vst [vmem:[%s1762_s17 + $0x148] sm:$0xff] %v1111_v51 }
 0x1fb   : > { %1160 = vst [vmem:[%s1762_s17 + $0x150] sm:$0xff] %v1111_v51  ;;  %1161 = vst [vmem:[%s1762_s17 + $0x158] sm:$0xff] %v1111_v51 }
 0x1fc   : > { %1162 = vst [vmem:[%s1762_s17 + $0x160] sm:$0xff] %v1111_v51  ;;  %1163 = vst [vmem:[%s1762_s17 + $0x168] sm:$0xff] %v1111_v51 }
 0x1fd   : > { %1164 = vst [vmem:[%s1762_s17 + $0x170] sm:$0xff] %v1111_v51  ;;  %1165 = vst [vmem:[%s1762_s17 + $0x178] sm:$0xff] %v1111_v51 }
 0x1fe   : > { %1118 = vst [vmem:[%s1762_s17] sm:$0xff] %v1101_v52  ;;  %1119 = vst [vmem:[%s1762_s17 + $0x8] sm:$0xff] %v1101_v52 }
 0x1ff   : > { %1120 = vst [vmem:[%s1762_s17 + $0x10] sm:$0xff] %v1101_v52  ;;  %1121 = vst [vmem:[%s1762_s17 + $0x18] sm:$0xff] %v1101_v52 }
 0x200   : > { %1122 = vst [vmem:[%s1762_s17 + $0x20] sm:$0xff] %v1101_v52  ;;  %1123 = vst [vmem:[%s1762_s17 + $0x28] sm:$0xff] %v1101_v52 }
 0x201   : > { %1124 = vst [vmem:[%s1762_s17 + $0x30] sm:$0xff] %v1101_v52  ;;  %1125 = vst [vmem:[%s1762_s17 + $0x38] sm:$0xff] %v1101_v52 }
 0x202   : > { %1126 = vst [vmem:[%s1762_s17 + $0x40] sm:$0xff] %v1101_v52  ;;  %1127 = vst [vmem:[%s1762_s17 + $0x48] sm:$0xff] %v1101_v52 }
 0x203   : > { %1128 = vst [vmem:[%s1762_s17 + $0x50] sm:$0xff] %v1101_v52  ;;  %1129 = vst [vmem:[%s1762_s17 + $0x58] sm:$0xff] %v1101_v52 }
 0x204   : > { %1130 = vst [vmem:[%s1762_s17 + $0x60] sm:$0xff] %v1101_v52  ;;  %1131 = vst [vmem:[%s1762_s17 + $0x68] sm:$0xff] %v1101_v52 }
 0x205   : > { %1132 = vst [vmem:[%s1762_s17 + $0x70] sm:$0xff] %v1101_v52  ;;  %1133 = vst [vmem:[%s1762_s17 + $0x78] sm:$0xff] %v1101_v52 }
 0x206   : > { %1166 = vst [vmem:[%s1762_s17 + $0x180] sm:$0xff] %v1116_v53  ;;  %1167 = vst [vmem:[%s1762_s17 + $0x188] sm:$0xff] %v1116_v53 }
 0x207   : > { %1168 = vst [vmem:[%s1762_s17 + $0x190] sm:$0xff] %v1116_v53  ;;  %1169 = vst [vmem:[%s1762_s17 + $0x198] sm:$0xff] %v1116_v53 }
 0x208   : > { %1170 = vst [vmem:[%s1762_s17 + $0x1a0] sm:$0xff] %v1116_v53  ;;  %1171 = vst [vmem:[%s1762_s17 + $0x1a8] sm:$0xff] %v1116_v53 }
 0x209   : > { %1172 = vst [vmem:[%s1762_s17 + $0x1b0] sm:$0xff] %v1116_v53  ;;  %1173 = vst [vmem:[%s1762_s17 + $0x1b8] sm:$0xff] %v1116_v53 }
 0x20a   : > { %1174 = vst [vmem:[%s1762_s17 + $0x1c0] sm:$0xff] %v1116_v53  ;;  %1175 = vst [vmem:[%s1762_s17 + $0x1c8] sm:$0xff] %v1116_v53 }
 0x20b   : > { %1176 = vst [vmem:[%s1762_s17 + $0x1d0] sm:$0xff] %v1116_v53  ;;  %1177 = vst [vmem:[%s1762_s17 + $0x1d8] sm:$0xff] %v1116_v53 }
 0x20c   : > { %1178 = vst [vmem:[%s1762_s17 + $0x1e0] sm:$0xff] %v1116_v53  ;;  %1179 = vst [vmem:[%s1762_s17 + $0x1e8] sm:$0xff] %v1116_v53 }
 0x20d   : > { %1180 = vst [vmem:[%s1762_s17 + $0x1f0] sm:$0xff] %v1116_v53  ;;  %1181 = vst [vmem:[%s1762_s17 + $0x1f8] sm:$0xff] %v1116_v53 }
 0x20e   : > { %1134 = vst [vmem:[%s1762_s17 + $0x80] sm:$0xff] %v1106_v54  ;;  %1135 = vst [vmem:[%s1762_s17 + $0x88] sm:$0xff] %v1106_v54 }
 0x20f   : > { %1136 = vst [vmem:[%s1762_s17 + $0x90] sm:$0xff] %v1106_v54  ;;  %1137 = vst [vmem:[%s1762_s17 + $0x98] sm:$0xff] %v1106_v54 }
 0x210   : > { %1138 = vst [vmem:[%s1762_s17 + $0xa0] sm:$0xff] %v1106_v54  ;;  %1139 = vst [vmem:[%s1762_s17 + $0xa8] sm:$0xff] %v1106_v54 }
 0x211   : > { %1140 = vst [vmem:[%s1762_s17 + $0xb0] sm:$0xff] %v1106_v54  ;;  %1141 = vst [vmem:[%s1762_s17 + $0xb8] sm:$0xff] %v1106_v54 }
 0x212   : > { %1142 = vst [vmem:[%s1762_s17 + $0xc0] sm:$0xff] %v1106_v54  ;;  %1143 = vst [vmem:[%s1762_s17 + $0xc8] sm:$0xff] %v1106_v54 }
 0x213   : > { %1144 = vst [vmem:[%s1762_s17 + $0xd0] sm:$0xff] %v1106_v54  ;;  %1145 = vst [vmem:[%s1762_s17 + $0xd8] sm:$0xff] %v1106_v54 }
 0x214   : > { %1146 = vst [vmem:[%s1762_s17 + $0xe0] sm:$0xff] %v1106_v54  ;;  %1147 = vst [vmem:[%s1762_s17 + $0xe8] sm:$0xff] %v1106_v54 }
 0x215   : > { %1148 = vst [vmem:[%s1762_s17 + $0xf0] sm:$0xff] %v1106_v54  ;;  %1149 = vst [vmem:[%s1762_s17 + $0xf8] sm:$0xff] %v1106_v54 }
 0x216 PF: > { %s1380_s13 = sshll.u32 %s1577_s25, 13  ;;  %s1198_s20 = sshll.u32 %s1762_s17, 4  ;;  %s2097_s20 = int_to_ptr.vmem [resolvable:$true] %s1198_s20 }
 0x217   : > { %s2094_s18 = scalar_lea.hbm %s2151_s5, %s1380_s13  ;;  %s1183_s28 = scalar_lea.sflag [#allocation6], %s1741_s29 }
 0x218   : > { %s1501_s6 = scalar_lea.vmem %s2097_s20, 8192  ;;  %p2159_p10 = scmp.ne.s32.totalorder %s2155_s10, 0 }
 0x219   : > { %p1502_p5 = scmp.ne.s32.totalorder %s2097_s20, %s1501_s6  ;;  %s1593_s7 = smov [#allocation7]  }
 0x21a   : > { %s1505_s8 = sshll.u32 %s1593_s7, 4  ;;  %s1506_s8 = int_to_ptr.vmem [resolvable:$false] %s1505_s8 }
 0x21b   : > { %p1503_p4 = pnand %p1502_p5, %p2159_p10  ;;  %s1507_s25 = scalar_lea.vmem %s1506_s8, 16384 }
 0x21c   : > { %p1508_p9 = scmp.lt.s32.totalorder %s2097_s20, %s1506_s8  ;;  %p1509_p11 = scmp.lt.s32.totalorder %s1507_s25, %s1501_s6 }
 0x21d   : > { %p1504_p7 = pneg %p1503_p4 }
 0x21e   : > { %p1510_p12 = por %p1509_p11, %p1508_p9 }
 0x220   : > { %p1511_p1 = pnand %p1510_p12, %p1504_p7 }
 0x222   : > { %1514 = shalt.err (!%p1511_p1)
}
 0x223   : > { %s1515_s17 = scalar_lea.hbm %s2094_s18, 8192  ;;  %s1519_s21 = scalar_lea.hbm %s2151_s5, 16384 }
 0x224   : > { %p1516_p3 = scmp.ne.s32.totalorder %s2094_s18, %s1515_s17  ;;  %p1520_p0 = scmp.lt.u32.totalorder %s2094_s18, %s2151_s5 }
 0x225   : > { %p1521_p2 = scmp.lt.u32.totalorder %s1519_s21, %s1515_s17  ;;  %p1523_p5 = scmp.lt.u32.totalorder %s1515_s17, %s2094_s18 }
 0x226   : > { %p1517_p6 = pnand %p1516_p3, %p2159_p10 }
 0x227   : > { %p1522_p13 = por %p1521_p2, %p1520_p0 }
 0x228   : > { %p1518_p8 = pneg %p1517_p6 }
 0x229   : > { %p1524_p4 = por %p1523_p5, %p1522_p13 }
 0x22b   : > { %p1525_p7 = pnand %p1524_p4, %p1518_p8 }
 0x22d   : > { %1528 = shalt.err (!%p1525_p7)
}
 0x22e   : > { %s1594_s13 = smov 2048   ;;  %s1595_s15 = smov 128  }
 0x22f   : > { %1386 = dma.vmem_to_hbm [thread:$0]  (%p2159_p10), %s2097_s20, 8192, %s2094_s18, %s1183_s28, %s1594_s13, %s1594_s13, %s1595_s15  }
 0x230 PF: > { %s1213_s9 = sand.u32 1, %s1565_s23   ;;  %p2160_p9 = scmp.ne.s32.totalorder %s2156_s12, 0 }
 0x231   : > { %p2161_p11 = scmp.ge.s32.totalorder %s1585_s27, 2  ;;  %s1214_s6 = scalar_lea.sflag [#allocation6], %s1213_s9 }
 0x233   : > { %p1393_p12 = pnand %p2161_p11, %p2160_p9 }
 0x235   : > { %1560 = dma.done.wait (!%p1393_p12), %s1214_s6, 8192  }
 0x236   : > { %1562 = vsyncadd (!%p1393_p12), %s1214_s6, 4294959104  ;;  %s27_s27 = sadd.s32 1, %s1585_s27   ;;  %s2162_s23 = smov %s1569_s0 }
 0x237   : > { %p24_p1 = scmp.ge.s32.totalorder %s27_s27, 4   ;;  %s2163_s0 = smov %s1573_s24 }
 0x238   : > { %s2164_s24 = smov %s1685_s11  ;;  %s2165_s25 = smov %s1581_s26 }
 0x239   : > { %s2166_s26 = smov %s2168_s30  ;;  %26 = sbr.rel (!%p24_p1) target bundleno = 21 (0x15), region = 92 }
 0x240   :  { %1219 = vsyncpa [#allocation5], 1 }
 0x241   :  { %1221 = vsyncpa [#allocation5 + $0x1], 1 }
 0x242   :  { %1222 = vsyncpa [#allocation6], 1 }
 0x243   :  { %1224 = vsyncpa [#allocation6 + $0x1], 1 }

</bundles_post_ra>
